<compile_context>
chip_gen: v6e
topology: v6e:2x2x1
jax: 0.10.0
libtpu: 0.0.40
codegen_flags: <defaults>
</compile_context>

<pallas_src>
import functools

import jax
import jax.numpy as jnp
from jax import lax
from jax.experimental import pallas as pl
from jax.experimental.pallas import tpu as pltpu


_ONE_HOT_MAX_VOCAB = 2048        # one-hot MXU gather only pays off for small vocabs
_DEFAULT_BLOCK_TOKENS = 256      # tokens gathered per grid step (multiple of 16)
_ID_LOOP_UNROLL = 8              # static unroll of the DMA-issue loop
_DMA_CORE_SPLITS = 2             # v7x has 2 TensorCores; extra axis is harmless on v5e/v6e


def _round_up(x: int, m: int) -> int:
    return (x + m - 1) // m * m


@functools.lru_cache(maxsize=None)
def _vmem_capacity_bytes() -> int:
    """Generation-aware VMEM capacity (v5e/v6e: 128 MiB, v7x: 64 MiB per TC)."""
    try:
        return int(pltpu.get_tpu_info().vmem_capacity_bytes)
    except Exception:
        return 64 * 1024 * 1024   # conservative fallback (v7x per-TC VMEM)


def _token_block(n_tok: int, block_tokens: int) -> int:
    """Token tile size: <= block_tokens, multiple of 16, shrinks for tiny inputs
    (adaptive T keeps padded-tail waste small for short sequences)."""
    return _round_up(min(block_tokens, _round_up(n_tok, 16)), 16)


def _flat_clamped_ids(input_ids: jax.Array, n_vocab: int, n_pad: int) -> jax.Array:
    """Flatten, clamp to [0, V) and zero-pad the token id stream to n_pad."""
    n_tok = input_ids.size
    flat = jnp.clip(input_ids.reshape(-1).astype(jnp.int32), 0, n_vocab - 1)
    return jnp.pad(flat, (0, n_pad - n_tok))


# TODO(synk): for D < 128 (64-dim WordLlama configs) pad the feature dim of the
# table to a 128-lane multiple so output stores / writeback DMAs stay lane-dense.


def _embedding_lookup_resident(input_ids, emb_table, *, block_tokens=_DEFAULT_BLOCK_TOKENS):
    """Small-vocab path: VMEM-resident table, one-hot MXU gather per (T, D) tile."""
    V, D = emb_table.shape
    n_tok = input_ids.size
    T = _token_block(n_tok, block_tokens)
    n_pad = _round_up(n_tok, T)
    n_blocks = n_pad // T
    # ids as an (n_pad, 1) int32 VMEM input: each block sees a (T, 1) column
    # vector with tokens on sublanes, ready to compare against a lane-iota.
    ids2d = _flat_clamped_ids(input_ids, V, n_pad).reshape(n_pad, 1)

    def kernel(ids_ref, table_ref, out_ref):
        # (T, 1) ids vs (T, V) lane-iota -> exact 0/1 one-hot rows; the
        # (T, V) x (V, D) matmul runs on the MXU and writes full (8, 128)
        # vregs instead of T masked (1, D) stores + T scalar-addressed loads.
        cols = lax.broadcasted_iota(jnp.int32, (T, V), 1)
        onehot = (ids_ref[...] == cols).astype(table_ref.dtype)
        out_ref[...] = jnp.dot(
            onehot, table_ref[...], preferred_element_type=jnp.float32
        ).astype(out_ref.dtype)

    out_flat = pl.pallas_call(
        kernel,
        out_shape=jax.ShapeDtypeStruct((n_pad, D), emb_table.dtype),
        grid=(n_blocks,),
        in_specs=[
            pl.BlockSpec((T, 1), lambda i: (i, 0)),   # this block's ids (VMEM vector)
            # Constant block index -> table is DMA'd into VMEM once and stays
            # resident for the whole grid (no per-token HBM traffic).
            pl.BlockSpec((V, D), lambda i: (0, 0)),
        ],
        out_specs=pl.BlockSpec((T, D), lambda i: (i, 0)),
        compiler_params=pltpu.CompilerParams(
            # No carried state -> token axis can shard across v7x's 2 TCs.
            dimension_semantics=("parallel",),
            vmem_limit_bytes=min(_vmem_capacity_bytes() // 2, 64 * 1024 * 1024),
        ),
    )(ids2d, emb_table)

    return out_flat[:n_tok].reshape(*input_ids.shape, D)


def _embedding_lookup_dma_gather(input_ids, emb_table, *, block_tokens=_DEFAULT_BLOCK_TOKENS):
    """Large-vocab path: direct HBM->HBM row-DMA gather, one slab-wait per block."""
    V, D = emb_table.shape
    n_tok = input_ids.size
    T = _token_block(n_tok, block_tokens)
    n_splits = _DMA_CORE_SPLITS if n_tok > T else 1
    n_pad = _round_up(n_tok, T * n_splits)
    n_blocks = n_pad // T
    blocks_per_split = n_blocks // n_splits
    # NOTE: the whole id stream is scalar-prefetched into SMEM (1-D SMEM pads
    # to the next power of two); for very long streams (~1e5+ tokens) the id
    # stream should be chunked across multiple calls.
    flat_ids = _flat_clamped_ids(input_ids, V, n_pad)

    def kernel(ids_ref, emb_hbm, out_hbm, sem):
        c = pl.program_id(0)               # TensorCore split ("parallel")
        j = pl.program_id(1)               # block within this split ("arbitrary")
        nj = pl.num_programs(1)

        def issue_block(jj, slot):
            # Issue T direct HBM->HBM row DMAs (table row -> output row); no
            # VMEM slab and no vreg copy exist on this path.  All SMEM id reads
            # happen before the semaphore wait below (keeps sst->sld forwarding).
            base = (c * nj + jj) * T

            def issue_row(t, carry):
                tok = ids_ref[base + t]
                pltpu.make_async_copy(emb_hbm.at[tok], out_hbm.at[base + t],
                                      sem.at[slot]).start()
                return carry

            lax.fori_loop(0, T, issue_row, 0, unroll=_ID_LOOP_UNROLL)

        slot = j % 2

        @pl.when(j == 0)
        def _():
            issue_block(0, 0)

        # Double-buffer: issue the next block's row DMAs into the other
        # semaphore slot before waiting on the current block's copies.
        @pl.when(j + 1 < nj)
        def _():
            issue_block(j + 1, 1 - slot)

        # Single slab-sized wait: the per-slot DMA semaphore accumulates the
        # bytes of all T row copies, so one (T, D) descriptor retires them all
        # (replaces T per-row dummy waits / semaphore polls).
        pltpu.make_async_copy(out_hbm.at[pl.ds(0, T)], out_hbm.at[pl.ds(0, T)],
                              sem.at[slot]).wait()

    out_flat = pl.pallas_call(
        kernel,
        out_shape=jax.ShapeDtypeStruct((n_pad, D), emb_table.dtype),
        grid_spec=pltpu.PrefetchScalarGridSpec(
            num_scalar_prefetch=1,                           # flat token ids -> SMEM
            grid=(n_splits, blocks_per_split),
            in_specs=[pl.BlockSpec(memory_space=pl.ANY)],    # table stays in HBM
            out_specs=pl.BlockSpec(memory_space=pl.ANY),     # output written via DMA only
            scratch_shapes=[pltpu.SemaphoreType.DMA((2,))],  # one DMA sem per buffer slot
        ),
        compiler_params=pltpu.CompilerParams(
            # Outer axis splits token blocks across v7x's 2 TCs; inner axis
            # carries the cross-step prefetch state so it stays sequential.
            dimension_semantics=("parallel", "arbitrary"),
            has_side_effects=True,                           # output produced by DMAs only
        ),
    )(flat_ids, emb_table)

    return out_flat[:n_tok].reshape(*input_ids.shape, D)


def embedding_lookup(input_ids: jax.Array, emb_table: jax.Array,
                     *, block_tokens: int = _DEFAULT_BLOCK_TOKENS) -> jax.Array:
    """Pallas embedding gather: out[..., :] = emb_table[input_ids[...], :].

    NOTE: out-of-range ids are clamped to [0, V) (real rows are returned
    instead of raising like torch.nn.Embedding).
    """
    V, D = emb_table.shape
    table_bytes = V * D * emb_table.dtype.itemsize
    # Resident one-hot path: small vocab AND the (pipeline double-buffered)
    # table comfortably inside the generation-aware VMEM budget (v7x: 64 MiB).
    if V <= _ONE_HOT_MAX_VOCAB and 2 * table_bytes <= _vmem_capacity_bytes() // 4:
        return _embedding_lookup_resident(input_ids, emb_table, block_tokens=block_tokens)
    return _embedding_lookup_dma_gather(input_ids, emb_table, block_tokens=block_tokens)


class WordLlamaEmbeddingJAX:
    """JAX/Pallas port of WordLlamaEmbedding (forward pass only)."""

    def __init__(self, n_vocab: int, dim: int, key: jax.Array, dtype=jnp.float32):
        # Deterministic synthetic frozen weights standing in for nn.Embedding.
        # NOTE: pass dtype=jnp.bfloat16 to halve gather HBM traffic and double
        # the vocab size that fits the VMEM-resident fast path; f32 kept here
        # to match the PyTorch module.
        self.embedding = jax.random.normal(key, (n_vocab, dim), dtype=jnp.float32).astype(dtype)
        # TODO(synk): tokenizer (AutoTokenizer) has no Pallas/JAX equivalent; omitted.

    def forward(self, tensors: dict) -> dict:
        return {
            "token_embeddings": embedding_lookup(tensors["input_ids"], self.embedding),
            "attention_mask": tensors["attention_mask"],
        }


if __name__ == "__main__":
    key = jax.random.PRNGKey(0)
    k_emb, k_ids, k_mask, k_ids2 = jax.random.split(key, 4)

    n_vocab, dim = 64, 128     # model.n_vocab, model.dim (small, lane-aligned)
    batch, seq = 2, 8

    model = WordLlamaEmbeddingJAX(n_vocab, dim, k_emb)

    input_ids = jax.random.randint(k_ids, (batch, seq), 0, n_vocab, dtype=jnp.int32)
    attention_mask = (jax.random.uniform(k_mask, (batch, seq)) > 0.3).astype(jnp.int32)

    out = model.forward({"input_ids": input_ids, "attention_mask": attention_mask})
    tok_emb = jax.block_until_ready(out["token_embeddings"])
    mask_out = jax.block_until_ready(out["attention_mask"])

    ref = jnp.take(model.embedding, input_ids, axis=0)
    assert tok_emb.shape == (batch, seq, dim)
    assert tok_emb.dtype == model.embedding.dtype
    # f32 resident path goes through the MXU one-hot matmul; the selected
    # value's exactness depends on the backend's f32 matmul pass count, so use
    # a tolerance here (bf16 and DMA paths below are checked bit-exactly).
    assert jnp.allclose(tok_emb, ref, rtol=1e-2, atol=1e-2)
    assert jnp.array_equal(mask_out, attention_mask)

    # bf16 table: the one-hot select is bit-exact irrespective of MXU passes.
    emb_bf16 = model.embedding.astype(jnp.bfloat16)
    out_bf16 = jax.block_until_ready(embedding_lookup(input_ids, emb_bf16))
    assert jnp.array_equal(out_bf16, jnp.take(emb_bf16, input_ids, axis=0))

    # Exercise the large-vocab manual-DMA gather path on enough tokens
    # (1024 -> 4 blocks, 2-way core split, 2 blocks per split) so both the
    # cross-step prefetch branch and the parallel split actually run.
    big_ids = jax.random.randint(k_ids2, (8, 128), 0, n_vocab, dtype=jnp.int32)
    dma_out = jax.block_until_ready(
        _embedding_lookup_dma_gather(big_ids, model.embedding))
    dma_ref = jnp.take(model.embedding, big_ids, axis=0)
    assert dma_out.shape == (8, 128, dim)
    assert jnp.array_equal(dma_out, dma_ref)

    print("KERNEL_OK")
</pallas_src>

<mosaic_0001>
module attributes {stable_mosaic.version = 11 : i64} {
  func.func @kernel(%arg0: i32, %arg1: memref<16x1xi32, #tpu.memory_space<vmem>>, %arg2: memref<64x128xf32, #tpu.memory_space<vmem>>, %arg3: memref<16x128xf32, #tpu.memory_space<vmem>>) attributes {dimension_semantics = [#tpu.dimension_semantics<parallel>], iteration_bounds = array<i64: 1>, scalar_prefetch = 0 : i64, scratch_operands = 0 : i64, tpu.core_type = #tpu.core_type<tc>, window_params = [{transform_indices = @transform_0, window_bounds = array<i64: 16, 1>}, {pipeline_mode = #tpu.pipeline_mode<synchronous>, transform_indices = @transform_1, window_bounds = array<i64: 64, 128>}, {transform_indices = @transform_2, window_bounds = array<i64: 16, 128>}]} {
    %0 = tpu.iota {dimensions = array<i32: 1>} : vector<16x64xi32>
    %c0 = arith.constant 0 : index
    %c0_0 = arith.constant 0 : index
    %1 = vector.load %arg1[%c0, %c0_0] : memref<16x1xi32, #tpu.memory_space<vmem>>, vector<16x1xi32>
    %2 = vector.broadcast %1 : vector<16x1xi32> to vector<16x64xi32>
    %3 = arith.cmpi eq, %2, %0 : vector<16x64xi32>
    %4 = arith.extui %3 : vector<16x64xi1> to vector<16x64xi32>
    %5 = arith.sitofp %4 : vector<16x64xi32> to vector<16x64xf32>
    %c0_1 = arith.constant 0 : index
    %c0_2 = arith.constant 0 : index
    %6 = vector.load %arg2[%c0_1, %c0_2] : memref<64x128xf32, #tpu.memory_space<vmem>>, vector<64x128xf32>
    %cst = arith.constant dense<0.000000e+00> : vector<16x128xf32>
    %7 = tpu.matmul %5, %6, %cst {dimension_numbers = #tpu.dot_dimension_numbers<[1], [0], [0], [1], [0, 0, 1, 1], [], []>} : vector<16x64xf32>, vector<64x128xf32>, vector<16x128xf32> -> vector<16x128xf32>
    %c0_3 = arith.constant 0 : index
    %c0_4 = arith.constant 0 : index
    %8 = vector.load %arg3[%c0_3, %c0_4] : memref<16x128xf32, #tpu.memory_space<vmem>>, vector<16x128xf32>
    tpu.vector_store %arg3[%c0_3, %c0_4], %7 {strides = array<i32>} : memref<16x128xf32, #tpu.memory_space<vmem>>, vector<16x128xf32>,
    return
  }
  func.func @transform_0(%arg0: i32) -> (i32, i32) {
    %c0_i32 = arith.constant 0 : i32
    %c0_i32_0 = arith.constant 0 : i32
    return %arg0, %c0_i32 : i32, i32
  }
  func.func @transform_1(%arg0: i32) -> (i32, i32) {
    %c0_i32 = arith.constant 0 : i32
    %c0_i32_0 = arith.constant 0 : i32
    %c0_i32_1 = arith.constant 0 : i32
    return %c0_i32, %c0_i32_0 : i32, i32
  }
  func.func @transform_2(%arg0: i32) -> (i32, i32) {
    %c0_i32 = arith.constant 0 : i32
    %c0_i32_0 = arith.constant 0 : i32
    return %arg0, %c0_i32 : i32, i32
  }
}

</mosaic_0001>

<bundles_post_ra>
// kernel: tpu_custom_call.1
= control target key start
LH: loop header
LB: loop body
LE: loop exit
PB: predicated region body
PF: predicated region fallthrough
CT: control target
= control target key end

     0   :  { %7 = vsyncpa [#allocation3], 0  ;;  %s274_s0 = inlined_call_operand.vmem [shape: s32[16,1], index: 0, kind: input, shape index: {}]   ;;  %s275_s1 = inlined_call_operand.hbm [shape: f32[64,128], index: 1, kind: input, shape index: {}]   ;;  %s276_s2 = inlined_call_operand.hbm [shape: f32[16,128], index: 2, kind: output, shape index: {}]  }
   0x1   :  { %8 = vsyncpa [#allocation4], 0  ;;  %s235_s9 = smov [#allocation2]  }
   0x2   :  { %s16_s10 = sshll.u32 %s235_s9, 4  ;;  %s17_s10 = int_to_ptr.vmem [resolvable:$true] %s16_s10 }
   0x3   :  { %s199_s11 = scalar_lea.vmem %s17_s10, 1024  ;;  %p204_p1 = scmp.lt.s32.totalorder %s17_s10, %s17_s10 }
   0x4   :  { %p200_p0 = scmp.ne.s32.totalorder %s17_s10, %s199_s11  ;;  %p205_p2 = scmp.lt.s32.totalorder %s199_s11, %s199_s11 }
   0x6   :  { %p206_p3 = por %p205_p2, %p204_p1 }
   0x8   :  { %p207_p4 = pnand %p206_p3, %p200_p0 }
   0xa   :  { %210 = shalt.err (!%p207_p4)
}
   0xb   :  { %s236_s12 = smov 128   ;;  %s237_s13 = smov 8  }
   0xc   :  { %22 = dma.hbm_to_vmem [thread:$0]  %s275_s1, 1024, %s17_s10, [#allocation3], %s236_s12, %s236_s12, %s237_s13  }
   0xd   :  { %231 = dma.done.wait [#allocation3], 1024  }
   0xe   :  { %232 = vsyncadd [#allocation3], 4294966272  ;;  %v238_v0 = vmov 0   ;;  %v28_v1 = vld [vmem:[%s274_s0] sm:$0xff]  ;;  %v49_v2 = vld [vmem:[#allocation2 + $0x38] sm:$0xff]  ;;  %v26_v11 = vlaneseq  ;;  %vm50_vm0 = vcmask 523264  }
   0xf   :  { %190 = vset.pattern.permute.xlu0 %v238_v0  ;;  %165 = vmatprep.subr.mxu0 %v49_v2  ;;  %v48_v3 = vld [vmem:[#allocation2 + $0x30] sm:$0xff]  ;;  %v29_v4 = vld [vmem:[%s274_s0 + $0x8] sm:$0xff]  ;;  %v46_v6 = vld [vmem:[#allocation2 + $0x20] sm:$0xff]  ;;  %v239_v14 = vmov 0.0   ;;  %s240_s0 = smov [#allocation5]  }
  0x10   :  { %31 = vperm.xlu0 %190, %v28_v1   ;;  %166 = vmatpush3.msra.mxu0 %v49_v2  ;;  %v47_v5 = vld [vmem:[#allocation2 + $0x28] sm:$0xff]  ;;  %v45_v7 = vld [vmem:[#allocation2 + $0x18] sm:$0xff]  ;;  %v44_v8 = vld [vmem:[#allocation2 + $0x10] sm:$0xff]  ;;  %v27_v12 = vand.u32 127, %v26_v11  ;;  %s139_s1 = sshll.u32 %s240_s0, 4  ;;  %s140_s1 = int_to_ptr.vmem [resolvable:$true] %s139_s1 }
  0x11   :  { %167 = vmatprep.subr.mxu0 %v48_v3  ;;  %v43_v9 = vld [vmem:[#allocation2 + $0x8] sm:$0xff]  ;;  %v42_v10 = vld [vmem:[#allocation2] sm:$0xff]  ;;  %s211_s20 = scalar_lea.vmem %s140_s1, 256  ;;  %p216_p6 = scmp.lt.s32.totalorder %s140_s1, %s140_s1 }
  0x12   :  { %168 = vmatpush3.msra.mxu0 %v48_v3  ;;  %p212_p5 = scmp.ne.s32.totalorder %s140_s1, %s211_s20  ;;  %p217_p7 = scmp.lt.s32.totalorder %s211_s20, %s211_s20 }
  0x13   :  { %169 = vmatprep.subr.mxu0 %v47_v5 }
  0x14   :  { %34 = vperm.xlu0 %190, %v29_v4   ;;  %170 = vmatpush3.msra.mxu0 %v47_v5  ;;  %p218_p8 = por %p217_p7, %p216_p6 }
  0x15   :  { %171 = vmatprep.subr.mxu0 %v46_v6 }
  0x16   :  { %172 = vmatpush3.msra.mxu0 %v46_v6  ;;  %p219_p9 = pnand %p218_p8, %p212_p5 }
  0x17   :  { %173 = vmatprep.subr.mxu0 %v45_v7 }
  0x18   :  { %174 = vmatpush3.msra.mxu0 %v45_v7 }
  0x19   :  { %175 = vmatprep.subr.mxu0 %v44_v8 }
  0x1a   :  { %176 = vmatpush3.msra.mxu0 %v44_v8 }
  0x1b   :  { %177 = vmatprep.subr.mxu0 %v43_v9 }
  0x1c   :  { %178 = vmatpush3.msra.mxu0 %v43_v9 }
  0x1d   :  { %179 = vmatprep.subr.mxu0 %v42_v10 }
  0x1e   :  { %180 = vmatpush3.msra.mxu0 %v42_v10 }
  0x8b   :  { %v32_v13 = vpop.permute.xlu0 %31 }
  0x8c   :  { %vm36_vm1 = vcmp.eq.s32.totalorder %v32_v13, %v27_v12 }
  0x8d   :  { %v151_v15 = vsel %vm36_vm1, 1.0, %v239_v14 }
  0x8e   :  { %181 = vmatprep.mubr.msk.f32.mxu0 %vm50_vm0, %v151_v15 }
  0x8f   :  { %v35_v16 = vpop.permute.xlu0 %34 }
  0x90   :  { %vm37_vm2 = vcmp.eq.s32.totalorder %v35_v16, %v27_v12 }
  0x91   :  { %v152_v17 = vsel %vm37_vm2, 1.0, %v239_v14 }
  0x92   :  { %182 = vmatmul.mubr.msk.f32.vlgmr.msra.gmra.mxu0 %vm50_vm0, %v152_v17 }
 0x152   :  { %v183_v18 = vpop.f32.mrf.mxu0 }
 0x153   :  { %133 = vst [vmem:[#allocation5 + $0x8] sm:$0xff] %v183_v18 }
 0x154   :  { %v123_v19 = vpop.f32.mrf.mxu0 }
 0x155   :  { %132 = vst [vmem:[#allocation5] sm:$0xff] %v123_v19 }
 0x156   :  { %222 = shalt.err (!%p219_p9)
}
 0x157   :  { %145 = dma.vmem_to_hbm [thread:$0]  %s140_s1, 256, %s276_s2, [#allocation4], %s236_s12, %s236_s12, %s237_s13  }
 0x158   :  { %233 = dma.done.wait [#allocation4], 256  }
 0x159   :  { %234 = vsyncadd [#allocation4], 4294967040 }
 0x15a   :  { %149 = vsyncpa [#allocation3], 1 }
 0x15b   :  { %150 = vsyncpa [#allocation4], 1 }

</bundles_post_ra>
